<compile_context>
chip_gen: v6e
topology: v6e:2x2x1
jax: 0.10.0
libtpu: 0.0.40
codegen_flags: <defaults>
</compile_context>

<pallas_src>
import functools

import jax
import jax.numpy as jnp
from jax.experimental import pallas as pl
from jax.experimental.pallas import tpu as pltpu

_EPS = 1e-6  # matches F.pairwise_distance default eps


def generate_subsamples(batch_size, num_images):
    """Same logic as TripletLoss.generate_subsamples (pure Python index glue)."""
    triplets = []
    for i in range(batch_size):
        anchor_idx = i
        positive_idx = i * num_images
        negative_indices = [i * num_images + j for j in range(num_images) if j != 0]
        for neg_idx in negative_indices:
            triplets.append((anchor_idx, positive_idx, neg_idx))
    return triplets


def _triplet_loss_kernel(text_ref, img_ref, o_ref, acc_ref, *, margin,
                         num_images, d_model, batch_size, tile_b):
    c = pl.program_id(0)          # partial-sum (TensorCore) index
    i = pl.program_id(1)          # batch-tile index within this partial
    n_inner = pl.num_programs(1)

    @pl.when(i == 0)
    def _init():
        acc_ref[...] = jnp.zeros_like(acc_ref)

    # eps hoisted onto the anchor: (a - x + eps) == ((a + eps) - x); one VALU pass
    # over (tile_b, D) instead of num_images passes over the big tensor.
    a_eps = text_ref[...].astype(jnp.float32) + _EPS                    # (tile_b, D)

    def dist_to(col):
        # images of batch row r live in lanes [col*D, (col+1)*D) of img row r
        img_col = img_ref[:, col * d_model:(col + 1) * d_model].astype(jnp.float32)
        diff = a_eps - img_col
        return jnp.sqrt(jnp.sum(diff * diff, axis=-1, keepdims=True))   # (tile_b, 1)

    d_ap = dist_to(0)                       # positive = image column 0, computed once
    hinge = jnp.zeros((tile_b, 1), jnp.float32)
    for j in range(1, num_images):          # unrolled static loop over the negatives
        hinge = hinge + jnp.maximum(d_ap - dist_to(j) + margin, 0.0)

    # Mask ragged-tail / duplicated clamp-tile rows AFTER the hinge (garbage -> 0).
    t = c * n_inner + i
    rows = t * tile_b + jax.lax.broadcasted_iota(jnp.int32, (tile_b, 1), 0)
    acc_ref[...] += jnp.where(rows < batch_size, hinge, 0.0)

    @pl.when(i == n_inner - 1)
    def _finish():
        o_ref[...] = jnp.reshape(jnp.sum(acc_ref[...]), (1, 1, 1))


def _vmem_limits():
    """Generation-aware scoped-VMEM limit and tile byte budget."""
    try:
        info = pltpu.get_tpu_info()
        cap = int(getattr(info, "vmem_capacity_bytes", 0)) or 64 * 1024 * 1024
    except Exception:
        cap = 64 * 1024 * 1024  # conservative floor (v7x physical VMEM per TC)
    # ~3/4 of physical, capped: 96 MiB on 128-MiB parts (v5e/v6e), 48 MiB on v7x.
    limit = min(cap * 3 // 4, 96 * 1024 * 1024)
    budget = limit // 2  # leave headroom for double-buffering bookkeeping / temps
    return int(limit), int(budget)


def _pick_tile_b(batch_size, num_images, d_model, in_bytes, budget_bytes):
    """Largest sublane-aligned batch tile whose double-buffered inputs + f32 row temps
    fit the budget (big tiles amortize the ~0.35 us/step grid overhead)."""
    per_row = 2 * (1 + num_images) * d_model * in_bytes + 6 * d_model * 4
    tile_b = max(1, budget_bytes // per_row)
    if tile_b >= batch_size:
        return int(batch_size)
    tile_b = max(8, (tile_b // 8) * 8)
    return int(min(tile_b, batch_size))


def triplet_loss(text_embeddings, image_embeddings, subsamples, margin=1.0):
    batch_size, d_model = text_embeddings.shape
    total_images, d_img = image_embeddings.shape
    assert d_img == d_model
    assert total_images % batch_size == 0
    num_images = total_images // batch_size
    assert num_images >= 2, "need at least one negative per anchor"
    num_triplets = len(subsamples)
    # The kernel exploits the contiguous layout produced by generate_subsamples.
    assert [tuple(t) for t in subsamples] == generate_subsamples(batch_size, num_images), (
        "triplet_loss kernel expects TripletLoss.generate_subsamples index structure")

    # Free metadata reshape: image row (i*NI + j) becomes lanes [j*D, (j+1)*D) of row i.
    imgs2 = image_embeddings.reshape(batch_size, num_images * d_model)

    in_bytes = jnp.dtype(text_embeddings.dtype).itemsize
    vmem_limit, tile_budget = _vmem_limits()
    tile_b = _pick_tile_b(batch_size, num_images, d_model, in_bytes, tile_budget)

    num_tiles = pl.cdiv(batch_size, tile_b)
    num_partials = 2 if num_tiles >= 2 else 1           # split reduction across 2 TCs (v7x)
    tiles_per_core = pl.cdiv(num_tiles, num_partials)

    def tile_idx(c, i):
        t = c * tiles_per_core + i
        if num_partials * tiles_per_core != num_tiles:
            # clamp the (at most one) overhanging step; its rows are masked in-kernel
            t = jnp.minimum(t, num_tiles - 1)
        return t

    kernel = functools.partial(
        _triplet_loss_kernel,
        margin=float(margin),
        num_images=int(num_images),
        d_model=int(d_model),
        batch_size=int(batch_size),
        tile_b=int(tile_b),
    )

    partials = pl.pallas_call(
        kernel,
        out_shape=jax.ShapeDtypeStruct((num_partials, 1, 1), jnp.float32),
        grid_spec=pltpu.PrefetchScalarGridSpec(
            num_scalar_prefetch=0,
            grid=(num_partials, tiles_per_core),
            in_specs=[
                pl.BlockSpec((tile_b, d_model),
                             lambda c, i: (tile_idx(c, i), 0)),
                pl.BlockSpec((tile_b, num_images * d_model),
                             lambda c, i: (tile_idx(c, i), 0)),
            ],
            out_specs=pl.BlockSpec((1, 1, 1), lambda c, i: (c, 0, 0)),
            scratch_shapes=[pltpu.VMEM((tile_b, 1), jnp.float32)],
        ),
        compiler_params=pltpu.CompilerParams(
            dimension_semantics=("parallel", "arbitrary"),
            vmem_limit_bytes=int(vmem_limit),
        ),
    )(text_embeddings, imgs2)
    return jnp.sum(partials) / jnp.float32(num_triplets)


def _reference_loss(text_embeddings, image_embeddings, subsamples, margin=1.0):
    """Pure-JAX reference mirroring torch.nn.functional.triplet_margin_loss."""
    losses = []
    for a_i, p_i, n_i in subsamples:
        a = text_embeddings[a_i].astype(jnp.float32)
        p = image_embeddings[p_i].astype(jnp.float32)
        n = image_embeddings[n_i].astype(jnp.float32)
        d_ap = jnp.sqrt(jnp.sum((a - p + _EPS) ** 2))
        d_an = jnp.sqrt(jnp.sum((a - n + _EPS) ** 2))
        losses.append(jnp.maximum(d_ap - d_an + margin, 0.0))
    return jnp.sum(jnp.stack(losses)) / len(subsamples)


if __name__ == "__main__":
    batch_size = 2
    num_images = 4
    D = 32

    key = jax.random.PRNGKey(0)
    k_text, k_img = jax.random.split(key)
    text_embeddings = jax.random.normal(k_text, (batch_size, D), dtype=jnp.float32)
    image_embeddings = jax.random.normal(
        k_img, (batch_size * num_images, D), dtype=jnp.float32
    )

    subsamples = generate_subsamples(batch_size, num_images)

    loss = triplet_loss(text_embeddings, image_embeddings, subsamples, margin=1.0)
    loss = jax.block_until_ready(loss)

    ref = _reference_loss(text_embeddings, image_embeddings, subsamples, margin=1.0)
    assert jnp.allclose(loss, ref, atol=1e-5, rtol=1e-5), (loss, ref)

    print("KERNEL_OK")
</pallas_src>

<mosaic_0001>
module attributes {stable_mosaic.version = 11 : i64} {
  func.func @_triplet_loss_kernel(%arg0: i32, %arg1: i32, %arg2: memref<2x32xf32, #tpu.memory_space<vmem>>, %arg3: memref<2x128xf32, #tpu.memory_space<vmem>>, %arg4: memref<1x1x1xf32, #tpu.memory_space<vmem>>, %arg5: memref<2x1xf32, #tpu.memory_space<vmem>>) attributes {dimension_semantics = [#tpu.dimension_semantics<parallel>, #tpu.dimension_semantics<arbitrary>], iteration_bounds = array<i64: 1, 1>, scalar_prefetch = 0 : i64, scratch_operands = 1 : i64, tpu.core_type = #tpu.core_type<tc>, window_params = [{transform_indices = @transform_0, window_bounds = array<i64: 2, 32>}, {transform_indices = @transform_1, window_bounds = array<i64: 2, 128>}, {transform_indices = @transform_2, window_bounds = array<i64: 1, 1, 1>}]} {
    %c0_i32 = arith.constant 0 : i32
    %0 = arith.cmpi eq, %arg1, %c0_i32 : i32
    %1 = arith.extui %0 : i1 to i32
    %c0_i32_0 = arith.constant 0 : i32
    %2 = arith.cmpi ne, %1, %c0_i32_0 : i32
    scf.if %2 {
      %cst_26 = arith.constant 0.000000e+00 : f32
      %65 = vector.broadcast %cst_26 : f32 to vector<2x1xf32>
      %c0_27 = arith.constant 0 : index
      %c0_28 = arith.constant 0 : index
      %66 = vector.load %arg5[%c0_27, %c0_28] : memref<2x1xf32, #tpu.memory_space<vmem>>, vector<2x1xf32>
      tpu.vector_store %arg5[%c0_27, %c0_28], %65 {strides = array<i32>} : memref<2x1xf32, #tpu.memory_space<vmem>>, vector<2x1xf32>,
    } else {
    }
    %c0 = arith.constant 0 : index
    %c0_1 = arith.constant 0 : index
    %3 = vector.load %arg2[%c0, %c0_1] : memref<2x32xf32, #tpu.memory_space<vmem>>, vector<2x32xf32>
    %cst = arith.constant 9.99999997E-7 : f32
    %4 = vector.broadcast %cst : f32 to vector<2x32xf32>
    %5 = arith.addf %3, %4 : vector<2x32xf32>
    %c0_2 = arith.constant 0 : index
    %c0_3 = arith.constant 0 : index
    %6 = vector.load %arg3[%c0_2, %c0_3] : memref<2x128xf32, #tpu.memory_space<vmem>>, vector<2x32xf32>
    %7 = arith.subf %5, %6 : vector<2x32xf32>
    %8 = arith.mulf %7, %7 : vector<2x32xf32>
    %cst_4 = arith.constant dense<0.000000e+00> : vector<2xf32>
    %9 = vector.multi_reduction <add>, %8, %cst_4 [1] : vector<2x32xf32> to vector<2xf32>
    %10 = vector.shape_cast %9 : vector<2xf32> to vector<2x1xf32>
    %11 = math.sqrt %10 : vector<2x1xf32>
    %cst_5 = arith.constant 0.000000e+00 : f32
    %12 = vector.broadcast %cst_5 : f32 to vector<2x1xf32>
    %c0_6 = arith.constant 0 : index
    %c32 = arith.constant 32 : index
    %13 = vector.load %arg3[%c0_6, %c32] : memref<2x128xf32, #tpu.memory_space<vmem>>, vector<2x32xf32>
    %14 = arith.subf %5, %13 : vector<2x32xf32>
    %15 = arith.mulf %14, %14 : vector<2x32xf32>
    %cst_7 = arith.constant dense<0.000000e+00> : vector<2xf32>
    %16 = vector.multi_reduction <add>, %15, %cst_7 [1] : vector<2x32xf32> to vector<2xf32>
    %17 = vector.shape_cast %16 : vector<2xf32> to vector<2x1xf32>
    %18 = math.sqrt %17 : vector<2x1xf32>
    %19 = arith.subf %11, %18 : vector<2x1xf32>
    %cst_8 = arith.constant 1.000000e+00 : f32
    %20 = vector.broadcast %cst_8 : f32 to vector<2x1xf32>
    %21 = arith.addf %19, %20 : vector<2x1xf32>
    %cst_9 = arith.constant 0.000000e+00 : f32
    %22 = vector.broadcast %cst_9 : f32 to vector<2x1xf32>
    %23 = arith.maximumf %21, %22 : vector<2x1xf32>
    %24 = arith.addf %12, %23 : vector<2x1xf32>
    %c0_10 = arith.constant 0 : index
    %c64 = arith.constant 64 : index
    %25 = vector.load %arg3[%c0_10, %c64] : memref<2x128xf32, #tpu.memory_space<vmem>>, vector<2x32xf32>
    %26 = arith.subf %5, %25 : vector<2x32xf32>
    %27 = arith.mulf %26, %26 : vector<2x32xf32>
    %cst_11 = arith.constant dense<0.000000e+00> : vector<2xf32>
    %28 = vector.multi_reduction <add>, %27, %cst_11 [1] : vector<2x32xf32> to vector<2xf32>
    %29 = vector.shape_cast %28 : vector<2xf32> to vector<2x1xf32>
    %30 = math.sqrt %29 : vector<2x1xf32>
    %31 = arith.subf %11, %30 : vector<2x1xf32>
    %cst_12 = arith.constant 1.000000e+00 : f32
    %32 = vector.broadcast %cst_12 : f32 to vector<2x1xf32>
    %33 = arith.addf %31, %32 : vector<2x1xf32>
    %cst_13 = arith.constant 0.000000e+00 : f32
    %34 = vector.broadcast %cst_13 : f32 to vector<2x1xf32>
    %35 = arith.maximumf %33, %34 : vector<2x1xf32>
    %36 = arith.addf %24, %35 : vector<2x1xf32>
    %c0_14 = arith.constant 0 : index
    %c96 = arith.constant 96 : index
    %37 = vector.load %arg3[%c0_14, %c96] : memref<2x128xf32, #tpu.memory_space<vmem>>, vector<2x32xf32>
    %38 = arith.subf %5, %37 : vector<2x32xf32>
    %39 = arith.mulf %38, %38 : vector<2x32xf32>
    %cst_15 = arith.constant dense<0.000000e+00> : vector<2xf32>
    %40 = vector.multi_reduction <add>, %39, %cst_15 [1] : vector<2x32xf32> to vector<2xf32>
    %41 = vector.shape_cast %40 : vector<2xf32> to vector<2x1xf32>
    %42 = math.sqrt %41 : vector<2x1xf32>
    %43 = arith.subf %11, %42 : vector<2x1xf32>
    %cst_16 = arith.constant 1.000000e+00 : f32
    %44 = vector.broadcast %cst_16 : f32 to vector<2x1xf32>
    %45 = arith.addf %43, %44 : vector<2x1xf32>
    %cst_17 = arith.constant 0.000000e+00 : f32
    %46 = vector.broadcast %cst_17 : f32 to vector<2x1xf32>
    %47 = arith.maximumf %45, %46 : vector<2x1xf32>
    %48 = arith.addf %36, %47 : vector<2x1xf32>
    %c1_i32 = arith.constant 1 : i32
    %49 = arith.muli %arg0, %c1_i32 : i32
    %50 = arith.addi %49, %arg1 : i32
    %c2_i32 = arith.constant 2 : i32
    %51 = arith.muli %50, %c2_i32 : i32
    %52 = tpu.iota {dimensions = array<i32: 0>} : vector<2x1xi32>
    %53 = vector.broadcast %51 : i32 to vector<2x1xi32>
    %54 = arith.addi %53, %52 : vector<2x1xi32>
    %c0_18 = arith.constant 0 : index
    %c0_19 = arith.constant 0 : index
    %55 = vector.load %arg5[%c0_18, %c0_19] : memref<2x1xf32, #tpu.memory_space<vmem>>, vector<2x1xf32>
    %c2_i32_20 = arith.constant 2 : i32
    %56 = vector.broadcast %c2_i32_20 : i32 to vector<2x1xi32>
    %57 = arith.cmpi slt, %54, %56 : vector<2x1xi32>
    %cst_21 = arith.constant 0.000000e+00 : f32
    %58 = vector.broadcast %cst_21 : f32 to vector<2x1xf32>
    %59 = arith.select %57, %48, %58 : vector<2x1xi1>, vector<2x1xf32>
    %60 = arith.addf %55, %59 : vector<2x1xf32>
    %c0_22 = arith.constant 0 : index
    %c0_23 = arith.constant 0 : index
    %61 = vector.load %arg5[%c0_22, %c0_23] : memref<2x1xf32, #tpu.memory_space<vmem>>, vector<2x1xf32>
    tpu.vector_store %arg5[%c0_22, %c0_23], %60 {strides = array<i32>} : memref<2x1xf32, #tpu.memory_space<vmem>>, vector<2x1xf32>,
    %c0_i32_24 = arith.constant 0 : i32
    %62 = arith.cmpi eq, %arg1, %c0_i32_24 : i32
    %63 = arith.extui %62 : i1 to i32
    %c0_i32_25 = arith.constant 0 : i32
    %64 = arith.cmpi ne, %63, %c0_i32_25 : i32
    scf.if %64 {
      %c0_26 = arith.constant 0 : index
      %c0_27 = arith.constant 0 : index
      %65 = vector.load %arg5[%c0_26, %c0_27] : memref<2x1xf32, #tpu.memory_space<vmem>>, vector<2x1xf32>
      %66 = vector.shape_cast %65 : vector<2x1xf32> to vector<1x2x1xf32>
      %cst_28 = arith.constant dense<0.000000e+00> : vector<1xf32>
      %67 = vector.multi_reduction <add>, %66, %cst_28 [1, 2] : vector<1x2x1xf32> to vector<1xf32>
      %68 = vector.shape_cast %67 : vector<1xf32> to vector<1x1x1xf32>
      %69 = vector.extract %68[0, 0, 0] : f32 from vector<1x1x1xf32>
      %70 = vector.broadcast %69 : f32 to vector<1x1x1xf32>
      %c0_29 = arith.constant 0 : index
      %c0_30 = arith.constant 0 : index
      %c0_31 = arith.constant 0 : index
      %71 = vector.load %arg4[%c0_29, %c0_30, %c0_31] : memref<1x1x1xf32, #tpu.memory_space<vmem>>, vector<1x1x1xf32>
      tpu.vector_store %arg4[%c0_29, %c0_30, %c0_31], %70 {strides = array<i32>} : memref<1x1x1xf32, #tpu.memory_space<vmem>>, vector<1x1x1xf32>,
    } else {
    }
    return
  }
  func.func @transform_0(%arg0: i32, %arg1: i32) -> (i32, i32) {
    %c1_i32 = arith.constant 1 : i32
    %0 = arith.muli %arg0, %c1_i32 : i32
    %1 = arith.addi %0, %arg1 : i32
    %c0_i32 = arith.constant 0 : i32
    %c0_i32_0 = arith.constant 0 : i32
    return %1, %c0_i32 : i32, i32
  }
  func.func @transform_1(%arg0: i32, %arg1: i32) -> (i32, i32) {
    %c1_i32 = arith.constant 1 : i32
    %0 = arith.muli %arg0, %c1_i32 : i32
    %1 = arith.addi %0, %arg1 : i32
    %c0_i32 = arith.constant 0 : i32
    %c0_i32_0 = arith.constant 0 : i32
    return %1, %c0_i32 : i32, i32
  }
  func.func @transform_2(%arg0: i32, %arg1: i32) -> (i32, i32, i32) {
    %c0_i32 = arith.constant 0 : i32
    %c0_i32_0 = arith.constant 0 : i32
    %c0_i32_1 = arith.constant 0 : i32
    return %arg0, %c0_i32, %c0_i32_0 : i32, i32, i32
  }
}

</mosaic_0001>

<bundles_post_ra>
// kernel: tpu_custom_call.1
= control target key start
LH: loop header
LB: loop body
LE: loop exit
PB: predicated region body
PF: predicated region fallthrough
CT: control target
= control target key end

     0   :  { %7 = vsyncpa [#allocation4], 0  ;;  %s290_s0 = inlined_call_operand.hbm [shape: f32[2,32], index: 0, kind: input, shape index: {}]   ;;  %s291_s1 = inlined_call_operand.hbm [shape: f32[2,128], index: 1, kind: input, shape index: {}]   ;;  %s292_s2 = inlined_call_operand.hbm [shape: f32[1,1,1], index: 2, kind: output, shape index: {}]  }
   0x1   :  { %8 = vsyncpa [#allocation7], 0 }
   0x2   :  { %9 = vsyncpa [#allocation5], 0  ;;  %s252_s9 = smov [#allocation3]   ;;  %s253_s11 = smov [#allocation6]  }
   0x3   :  { %s19_s10 = sshll.u32 %s252_s9, 4  ;;  %s32_s12 = sshll.u32 %s253_s11, 4  ;;  %s20_s10 = int_to_ptr.vmem [resolvable:$true] %s19_s10  ;;  %s33_s12 = int_to_ptr.vmem [resolvable:$true] %s32_s12 }
   0x4   :  { %s194_s13 = scalar_lea.vmem %s20_s10, 32  ;;  %p199_p1 = scmp.lt.s32.totalorder %s20_s10, %s20_s10 }
   0x5   :  { %p195_p0 = scmp.ne.s32.totalorder %s20_s10, %s194_s13  ;;  %p200_p2 = scmp.lt.s32.totalorder %s194_s13, %s194_s13 }
   0x7   :  { %p201_p3 = por %p200_p2, %p199_p1 }
   0x9   :  { %p202_p4 = pnand %p201_p3, %p195_p0 }
   0xb   :  { %205 = shalt.err (!%p202_p4)
}
   0xc   :  { %22 = dma.hbm_to_vmem [thread:$0]  %s290_s0, 32, %s20_s10, [#allocation4]  }
   0xd   :  { %s214_s16 = scalar_lea.vmem %s33_s12, 32  ;;  %p219_p6 = scmp.lt.s32.totalorder %s33_s12, %s33_s12 }
   0xe   :  { %p215_p5 = scmp.ne.s32.totalorder %s33_s12, %s214_s16  ;;  %p220_p7 = scmp.lt.s32.totalorder %s214_s16, %s214_s16 }
  0x10   :  { %p221_p8 = por %p220_p7, %p219_p6 }
  0x12   :  { %p222_p9 = pnand %p221_p8, %p215_p5 }
  0x14   :  { %225 = shalt.err (!%p222_p9)
}
  0x15   :  { %35 = dma.hbm_to_vmem [thread:$0]  %s291_s1, 32, %s33_s12, [#allocation7]  }
  0x16   :  { %246 = dma.done.wait [#allocation4], 32  }
  0x17   :  { %247 = vsyncadd [#allocation4], 4294967264 }
  0x18   :  { %248 = dma.done.wait [#allocation7], 32  }
  0x19   :  { %249 = vsyncadd [#allocation7], 4294967264  ;;  %v52_v0 = vld [vmem:[#allocation6] sm:$0x3]  ;;  %s254_s19 = smov 32   ;;  %s255_s20 = smov 96   ;;  %v126_v45 = vlaneseq }
  0x1a   :  { %105 = vrot.lane.b32.xlu1 %v52_v0, %s254_s19  ;;  %67 = vrot.lane.b32.xlu0 %v52_v0, %s255_s20  ;;  %s256_s0 = smov 64   ;;  %v50_v1 = vld [vmem:[#allocation3] sm:$0x3]  ;;  %vm55_vm0 = vcmask 254976   ;;  %vm48_vm1 = vcmask 1024   ;;  %v257_v18 = vmov 0.0  }
  0x1b   :  { %v51_v2 = vadd.f32 1e-06, %v50_v1  ;;  %49 = vst.msk [vmem:[#allocation2] sm:$0x3] %vm48_vm1, %v257_v18  ;;  %v127_v50 = vshrl.u32 %v126_v45, 7  ;;  %s258_s1 = smov [#allocation8]  }
  0x1c   :  { %s159_s21 = sshll.u32 %s258_s1, 4  ;;  %vm151_vm11 = vcmask 0   ;;  %s160_s21 = int_to_ptr.vmem [resolvable:$true] %s159_s21 }
  0x1d   :  { %v53_v3 = vsub.f32 %v51_v2, %v52_v0  ;;  %vm131_vm10 = vcmp.lt.s32.totalorder %v127_v50, 2  ;;  %s226_s23 = scalar_lea.vmem %s160_s21, 16  ;;  %s230_s24 = scalar_lea.vmem %s160_s21, 32 }
  0x1e   :  { %86 = vrot.lane.b32.xlu0 %v52_v0, %s256_s0  ;;  %p227_p10 = scmp.ne.s32.totalorder %s160_s21, %s226_s23  ;;  %p231_p11 = scmp.lt.s32.totalorder %s160_s21, %s160_s21 }
  0x1f   :  { %v54_v4 = vmul.f32 %v53_v3, %v53_v3  ;;  %p232_p12 = scmp.lt.s32.totalorder %s230_s24, %s226_s23 }
  0x21   :  { %v56_v5 = vsel %vm55_vm0, %v54_v4, 0.0  ;;  %p233_p13 = por %p232_p12, %p231_p11 }
  0x22   :  { %v130_v56 = vld [vmem:[#allocation2] sm:$0x3] }
  0x23   :  { %p234_p0 = pnand %p233_p13, %p227_p10 }
  0x3e   :  { %57 = vadd.xlane.f32.xlu1 %v56_v5 }
  0x8c   :  { %v106_v6 = vpop.permute.xlu1 %105  ;;  %v68_v7 = vpop.permute.xlu0 %67 }
  0x8d   :  { %v108_v8 = vsub.f32 %v51_v2, %v106_v6  ;;  %v70_v9 = vsub.f32 %v51_v2, %v68_v7 }
  0x8f   :  { %v109_v10 = vmul.f32 %v108_v8, %v108_v8  ;;  %v71_v11 = vmul.f32 %v70_v9, %v70_v9 }
  0x90   :  { %v87_v12 = vpop.permute.xlu0 %86 }
  0x91   :  { %v89_v13 = vsub.f32 %v51_v2, %v87_v12  ;;  %v72_v14 = vsel %vm55_vm0, %v71_v11, 0.0  ;;  %v110_v15 = vsel %vm55_vm0, %v109_v10, 0.0 }
  0x92   :  { %73 = vadd.xlane.f32.xlu0 %v72_v14  ;;  %111 = vadd.xlane.f32.xlu1 %v110_v15 }
  0x93   :  { %v90_v16 = vmul.f32 %v89_v13, %v89_v13 }
  0x95   :  { %v91_v17 = vsel %vm55_vm0, %v90_v16, 0.0 }
  0x96   :  { %92 = vadd.xlane.f32.xlu0 %v91_v17 }
  0xc7   :  { %v58_v19 = vpop.xlane.xlu1 %57 }
  0xc8   :  { %178 = vrsqrt.f32 %v58_v19  ;;  %vm61_vm2 = vcmp.eq.f32.partialorder %v58_v19, inf  ;;  %v64_v26 = vand.u32 2147483648, %v58_v19  ;;  %vm63_vm3 = vcmp.eq.f32.partialorder %v58_v19, 0.0 }
  0xd5   :  { %v179_v23 = vpop.eup %178 }
  0xd6   :  { %v60_v24 = vmul.f32 %v179_v23, %v58_v19 }
  0xd8   :  { %v62_v28 = vsel %vm61_vm2, %v58_v19, %v60_v24 }
  0xd9   :  { %v65_v36 = vsel %vm63_vm3, %v64_v26, %v62_v28 }
 0x11b   :  { %v74_v20 = vpop.xlane.xlu0 %73  ;;  %v112_v21 = vpop.xlane.xlu1 %111 }
 0x11c   :  { %180 = vrsqrt.f32 %v74_v20  ;;  %vm77_vm4 = vcmp.eq.f32.partialorder %v74_v20, inf  ;;  %v80_v30 = vand.u32 2147483648, %v74_v20  ;;  %vm79_vm5 = vcmp.eq.f32.partialorder %v74_v20, 0.0 }
 0x11d   :  { %182 = vrsqrt.f32 %v112_v21  ;;  %vm115_vm6 = vcmp.eq.f32.partialorder %v112_v21, inf  ;;  %v118_v33 = vand.u32 2147483648, %v112_v21  ;;  %vm117_vm7 = vcmp.eq.f32.partialorder %v112_v21, 0.0 }
 0x11f   :  { %v93_v22 = vpop.xlane.xlu0 %92 }
 0x120   :  { %184 = vrsqrt.f32 %v93_v22  ;;  %vm96_vm8 = vcmp.eq.f32.partialorder %v93_v22, inf  ;;  %v99_v41 = vand.u32 2147483648, %v93_v22  ;;  %vm98_vm9 = vcmp.eq.f32.partialorder %v93_v22, 0.0 }
 0x129   :  { %v181_v25 = vpop.eup %180 }
 0x12a   :  { %v183_v27 = vpop.eup %182  ;;  %v76_v29 = vmul.f32 %v181_v25, %v74_v20 }
 0x12b   :  { %v114_v31 = vmul.f32 %v183_v27, %v112_v21 }
 0x12c   :  { %v78_v32 = vsel %vm77_vm4, %v74_v20, %v76_v29 }
 0x12d   :  { %v185_v34 = vpop.eup %184  ;;  %v81_v35 = vsel %vm79_vm5, %v80_v30, %v78_v32  ;;  %v116_v37 = vsel %vm115_vm6, %v112_v21, %v114_v31 }
 0x12e   :  { %v82_v38 = vsub.f32 %v65_v36, %v81_v35  ;;  %v119_v39 = vsel %vm117_vm7, %v118_v33, %v116_v37  ;;  %v95_v40 = vmul.f32 %v185_v34, %v93_v22 }
 0x12f   :  { %v120_v42 = vsub.f32 %v65_v36, %v119_v39 }
 0x130   :  { %v97_v43 = vsel %vm96_vm8, %v93_v22, %v95_v40  ;;  %v83_v46 = vadd.f32 1.0, %v82_v38 }
 0x131   :  { %v100_v44 = vsel %vm98_vm9, %v99_v41, %v97_v43  ;;  %v121_v48 = vadd.f32 1.0, %v120_v42 }
 0x132   :  { %v101_v47 = vsub.f32 %v65_v36, %v100_v44  ;;  %v84_v51 = vmax.f32 %v83_v46, 0.0 }
 0x133   :  { %v122_v53 = vmax.f32 %v121_v48, 0.0 }
 0x134   :  { %v102_v49 = vadd.f32 1.0, %v101_v47 }
 0x136   :  { %v103_v52 = vmax.f32 %v102_v49, 0.0 }
 0x138   :  { %v104_v54 = vadd.f32 %v103_v52, %v84_v51 }
 0x13a   :  { %v123_v55 = vadd.f32 %v122_v53, %v104_v54 }
 0x13c   :  { %v132_v57 = vsel %vm131_vm10, %v123_v55, 0.0 }
 0x13d   :  { %v133_v58 = vadd.f32 %v132_v57, %v130_v56 }
 0x13f   :  { %135 = vst.msk [vmem:[#allocation2] sm:$0x3] %vm48_vm1, %v133_v58 }
 0x146   :  { %v139_v59 = vld [vmem:[#allocation2] sm:$0x3] }
 0x147   :  { %v140_v60 = vsel %vm48_vm1, %v139_v59, 0.0 }
 0x148   :  { %141 = vadd.xlane.f32.xlu0 %v140_v60 }
 0x1d1   :  { %v142_v61 = vpop.xlane.xlu0 %141 }
 0x1d2   :  { %v143_v62 = vrot.slane %v142_v61, 4 }
 0x1d4   :  { %v144_v63 = vadd.f32 %v143_v62, %v142_v61 }
 0x1d6   :  { %v145_v0 = vrot.slane %v144_v63, 2 }
 0x1d8   :  { %v146_v1 = vadd.f32 %v145_v0, %v144_v63 }
 0x1da   :  { %v147_v2 = vrot.slane %v146_v1, 1 }
 0x1dc   :  { %v148_v3 = vadd.f32 %v147_v2, %v146_v1 }
 0x1de   :  { %169 = vpush %v148_v3 }
 0x20f   :  { %s170_s22 = spop %169 }
 0x210   :  { %v150_v4 = vstv %s170_s22 }
 0x211   :  { %152 = vst.msk [vmem:[#allocation8] sm:$0x1] %vm151_vm11, %v150_v4 }
 0x212   :  { %237 = shalt.err (!%p234_p0)
}
 0x213   :  { %162 = dma.vmem_to_hbm [thread:$0]  %s160_s21, 16, %s292_s2, [#allocation5]  }
 0x214   :  { %250 = dma.done.wait [#allocation5], 16  }
 0x215   :  { %251 = vsyncadd [#allocation5], 4294967280 }
 0x216   :  { %166 = vsyncpa [#allocation4], 1 }
 0x217   :  { %167 = vsyncpa [#allocation7], 1 }
 0x218   :  { %168 = vsyncpa [#allocation5], 1 }

</bundles_post_ra>
